<compile_context>
chip_gen: v5e
topology: v5e:2x2
jax: 0.10.0
libtpu: 0.0.40
codegen_flags: <defaults>
</compile_context>

<pallas_src>
import functools

import jax
import jax.numpy as jnp
from jax.experimental import pallas as pl
from jax.experimental.pallas import tpu as pltpu

_ALIGN = 256                          # K/E lane alignment: full 256-wide MXU on v6e/v7x
_ROW_ALIGN = 128                      # row-tile granularity
_TM_CAP = 2048                        # upper bound on the row tile
_TILE_VMEM_BUDGET = 24 * 1024 * 1024  # target bytes for resident + double-buffered tiles


def _round_up(x: int, m: int) -> int:
    return (x + m - 1) // m * m


def _choose_row_tile(M: int, tm_budget: int):
    """Pick (tm, m_pad, grid_m) for the patch-row axis."""
    m128 = _round_up(M, _ROW_ALIGN)
    tm_budget = max(_ROW_ALIGN, min((tm_budget // _ROW_ALIGN) * _ROW_ALIGN, _TM_CAP))
    if m128 <= tm_budget:
        # Fits in one tile; split in two (no extra padding) when possible so both
        # v7x TensorCores get work on the 'parallel' axis.
        if m128 >= 2 * _ROW_ALIGN and m128 % (2 * _ROW_ALIGN) == 0:
            tm = m128 // 2
        else:
            tm = m128
    elif M % _ROW_ALIGN == 0:
        # M already aligned: pick a 128-multiple divisor so m_pad == M (no
        # post-kernel slice); prefer an even step count, then the largest tile.
        best_t, best_key = _ROW_ALIGN, ((M // _ROW_ALIGN) % 2 == 0, _ROW_ALIGN)
        for t in range(_ROW_ALIGN, tm_budget + 1, _ROW_ALIGN):
            if M % t == 0:
                key = ((M // t) % 2 == 0, t)
                if key > best_key:
                    best_key, best_t = key, t
        tm = best_t
    else:
        # Generic path: pick an even step count first, then size tm to minimize
        # trailing zero-padding (dense edge tile).
        g = -(-m128 // tm_budget)
        if g > 1 and g % 2:
            g += 1
        tm = _round_up(-(-m128 // g), _ROW_ALIGN)
    grid_m = -(-m128 // tm)
    return tm, grid_m * tm, grid_m


def _patch_embed_kernel(x_ref, w_ref, b_ref, o_ref):
    # One grid step = one (tm, k_pad) row tile of the patch matrix.
    # MXU matmul with f32 accumulation; f32 bias add on the VPU; cast on store.
    acc = jnp.dot(x_ref[...], w_ref[...], preferred_element_type=jnp.float32)
    o_ref[...] = (acc + b_ref[...]).astype(o_ref.dtype)


def patch_embed_2d(x, weight, bias, *, patch_size, flatten=True,
                   compute_dtype=jnp.bfloat16, out_dtype=jnp.bfloat16):
    """PatchEmbed2D forward.

    x:      (B, C, H, W) float32
    weight: (E, C, ph, pw) float32   (PyTorch Conv2d weight layout)
    bias:   (E,) float32
    returns (B, num_patches, E) in `out_dtype` if flatten else (B, E, gh, gw).
    Set compute_dtype=out_dtype=jnp.float32 for strict f32 Conv2d parity.
    """
    B, C, H, W = x.shape
    ph, pw = patch_size
    assert H % ph == 0 and W % pw == 0, "image size must be divisible by patch size"
    gh, gw = H // ph, W // pw
    num_patches = gh * gw
    E = weight.shape[0]
    K = C * ph * pw
    M = B * num_patches

    # ---- padded / tiled geometry -------------------------------------------
    k_pad = _round_up(K, _ALIGN)
    e_pad = _round_up(E, _ALIGN)
    x_bytes = jnp.dtype(compute_dtype).itemsize
    o_bytes = jnp.dtype(out_dtype).itemsize
    # Resident (single-buffered) weight/bias + double-buffered x / out tiles.
    fixed = k_pad * e_pad * x_bytes + 8 * e_pad * 4
    per_row = 2 * k_pad * x_bytes + 2 * e_pad * o_bytes
    tm_budget = max(_ROW_ALIGN, (_TILE_VMEM_BUDGET - fixed) // per_row)
    tm, m_pad, grid_m = _choose_row_tile(M, tm_budget)
    # NOTE: for very large K (>= ~8192) add a trailing 'arbitrary' K grid axis with a
    # (tm, e_pad) f32 accumulator scratch; ViT-sized K stays fully resident here.

    # ---- patchify + cast + zero-pad: one elementwise/transpose producer ------
    # allow_input_fusion lets XLA fuse this into the kernel's input DMA instead of
    # materializing a second copy of the image in HBM.
    # TODO(synk): verify via HLO/xprof that this producer actually fuses; if it
    # materializes, move patchify inside the kernel with a (B*gh)-row grid axis.
    xp = x.reshape(B, C, gh, ph, gw, pw)
    xp = jnp.transpose(xp, (0, 2, 4, 1, 3, 5))        # (B, gh, gw, C, ph, pw)
    xp = xp.reshape(M, K).astype(compute_dtype)
    xp = jnp.pad(xp, ((0, m_pad - M), (0, k_pad - K)))

    # Weight/bias prep is constant-foldable under jit; cache upstream if the same
    # weights are reused across many separately-jitted calls.
    w2d = jnp.pad(weight.reshape(E, K).T.astype(compute_dtype),
                  ((0, k_pad - K), (0, e_pad - E)))   # (k_pad, e_pad)
    b2d = jnp.pad(bias.astype(jnp.float32), (0, e_pad - E)).reshape(1, e_pad)

    # ---- VMEM budget: resident weight/bias + double-buffered tiles + headroom
    vmem_need = fixed + tm * per_row
    vmem_limit = int(min(48 << 20, max(vmem_need + (4 << 20), 32 << 20)))

    def _resident_spec(block_shape):
        # Grid-constant block: one VMEM buffer suffices (the 2nd pipeline buffer
        # would never be filled). Fall back gracefully if pipeline_mode is absent.
        try:
            return pl.BlockSpec(block_shape, lambda i: (0, 0),
                                pipeline_mode=pl.Buffered(1))
        except TypeError:
            return pl.BlockSpec(block_shape, lambda i: (0, 0))

    out = pl.pallas_call(
        _patch_embed_kernel,
        out_shape=jax.ShapeDtypeStruct((m_pad, e_pad), out_dtype),
        grid_spec=pltpu.PrefetchScalarGridSpec(
            num_scalar_prefetch=0,
            grid=(grid_m,),
            in_specs=[
                pl.BlockSpec((tm, k_pad), lambda i: (i, 0)),   # patch rows (pipelined)
                _resident_spec((k_pad, e_pad)),                # weight (resident)
                _resident_spec((1, e_pad)),                    # bias   (resident)
            ],
            out_specs=pl.BlockSpec((tm, e_pad), lambda i: (i, 0)),
        ),
        compiler_params=pltpu.CompilerParams(
            dimension_semantics=("parallel",),
            vmem_limit_bytes=vmem_limit,
            allow_input_fusion=[True, True, True],
        ),
    )(xp, w2d, b2d)

    if m_pad != M or e_pad != E:
        out = out[:M, :E]
    out = out.reshape(B, num_patches, E)
    if not flatten:
        # TODO(synk): if flatten=False is hot, emit (B, E, gh, gw) directly from the
        # kernel via a different out BlockSpec instead of this wrapper transpose.
        out = out.reshape(B, gh, gw, E).transpose(0, 3, 1, 2)    # (B, E, gh, gw)
    return out


def _reference(x, weight, bias, patch_size):
    # Pure-JAX f32 reference: strided conv == patch projection.
    y = jax.lax.conv_general_dilated(
        x, weight, window_strides=patch_size, padding="VALID",
        dimension_numbers=("NCHW", "OIHW", "NCHW"))
    y = y + bias.reshape(1, -1, 1, 1)
    B, E, gh, gw = y.shape
    return y.reshape(B, E, gh * gw).transpose(0, 2, 1)


if __name__ == "__main__":
    # Small shapes consistent with the module: img 16x16, patch 4, C=4, E=32.
    B, C, H, W = 2, 4, 16, 16
    ph, pw = 4, 4
    embed_dim = 32

    key = jax.random.PRNGKey(0)
    kx, kw, kb = jax.random.split(key, 3)
    x = jax.random.normal(kx, (B, C, H, W), dtype=jnp.float32)
    weight = jax.random.normal(kw, (embed_dim, C, ph, pw), dtype=jnp.float32) * 0.02
    bias = jax.random.normal(kb, (embed_dim,), dtype=jnp.float32) * 0.02

    run = jax.jit(functools.partial(patch_embed_2d, patch_size=(ph, pw), flatten=True))
    out = jax.block_until_ready(run(x, weight, bias))

    ref = _reference(x, weight, bias, (ph, pw))
    assert out.shape == (B, (H // ph) * (W // pw), embed_dim), out.shape
    # bf16 operands / bf16 output (f32 accumulation) -> bf16-level tolerance vs f32 ref.
    out_f32 = out.astype(jnp.float32)
    max_err = float(jnp.max(jnp.abs(out_f32 - ref)))
    assert jnp.allclose(out_f32, ref, atol=2e-2, rtol=2e-2), max_err

    print("KERNEL_OK")
</pallas_src>

<mosaic_0001>
module attributes {stable_mosaic.version = 11 : i64} {
  func.func @_patch_embed_kernel(%arg0: i32, %arg1: memref<128x256xbf16, #tpu.memory_space<vmem>>, %arg2: memref<256x256xbf16, #tpu.memory_space<vmem>>, %arg3: memref<1x256xf32, #tpu.memory_space<vmem>>, %arg4: memref<128x256xbf16, #tpu.memory_space<vmem>>) attributes {dimension_semantics = [#tpu.dimension_semantics<parallel>], iteration_bounds = array<i64: 1>, scalar_prefetch = 0 : i64, scratch_operands = 0 : i64, tpu.core_type = #tpu.core_type<tc>, window_params = [{transform_indices = @transform_0, window_bounds = array<i64: 128, 256>}, {pipeline_mode = #tpu.pipeline_mode<synchronous>, transform_indices = @transform_1, window_bounds = array<i64: 256, 256>}, {pipeline_mode = #tpu.pipeline_mode<synchronous>, transform_indices = @transform_2, window_bounds = array<i64: 1, 256>}, {transform_indices = @transform_3, window_bounds = array<i64: 128, 256>}]} {
    %c0 = arith.constant 0 : index
    %c0_0 = arith.constant 0 : index
    %0 = vector.load %arg1[%c0, %c0_0] : memref<128x256xbf16, #tpu.memory_space<vmem>>, vector<128x256xbf16>
    %c0_1 = arith.constant 0 : index
    %c0_2 = arith.constant 0 : index
    %1 = vector.load %arg2[%c0_1, %c0_2] : memref<256x256xbf16, #tpu.memory_space<vmem>>, vector<256x256xbf16>
    %cst = arith.constant dense<0.000000e+00> : vector<128x256xf32>
    %2 = tpu.matmul %0, %1, %cst {dimension_numbers = #tpu.dot_dimension_numbers<[1], [0], [0], [1], [0, 0, 1, 1], [], []>} : vector<128x256xbf16>, vector<256x256xbf16>, vector<128x256xf32> -> vector<128x256xf32>
    %c0_3 = arith.constant 0 : index
    %c0_4 = arith.constant 0 : index
    %3 = vector.load %arg3[%c0_3, %c0_4] : memref<1x256xf32, #tpu.memory_space<vmem>>, vector<1x256xf32>
    %4 = vector.broadcast %3 : vector<1x256xf32> to vector<128x256xf32>
    %5 = arith.addf %2, %4 : vector<128x256xf32>
    %6 = arith.truncf %5 : vector<128x256xf32> to vector<128x256xbf16>
    %c0_5 = arith.constant 0 : index
    %c0_6 = arith.constant 0 : index
    %7 = vector.load %arg4[%c0_5, %c0_6] : memref<128x256xbf16, #tpu.memory_space<vmem>>, vector<128x256xbf16>
    tpu.vector_store %arg4[%c0_5, %c0_6], %6 {strides = array<i32>} : memref<128x256xbf16, #tpu.memory_space<vmem>>, vector<128x256xbf16>,
    return
  }
  func.func @transform_0(%arg0: i32) -> (i32, i32) {
    %c0_i32 = arith.constant 0 : i32
    %c0_i32_0 = arith.constant 0 : i32
    return %arg0, %c0_i32 : i32, i32
  }
  func.func @transform_1(%arg0: i32) -> (i32, i32) {
    %c0_i32 = arith.constant 0 : i32
    %c0_i32_0 = arith.constant 0 : i32
    %c0_i32_1 = arith.constant 0 : i32
    return %c0_i32, %c0_i32_0 : i32, i32
  }
  func.func @transform_2(%arg0: i32) -> (i32, i32) {
    %c0_i32 = arith.constant 0 : i32
    %c0_i32_0 = arith.constant 0 : i32
    %c0_i32_1 = arith.constant 0 : i32
    return %c0_i32, %c0_i32_0 : i32, i32
  }
  func.func @transform_3(%arg0: i32) -> (i32, i32) {
    %c0_i32 = arith.constant 0 : i32
    %c0_i32_0 = arith.constant 0 : i32
    return %arg0, %c0_i32 : i32, i32
  }
}

</mosaic_0001>

<bundles_post_ra>
// kernel: patch_embed_2d.2
= control target key start
LH: loop header
LB: loop body
LE: loop exit
PB: predicated region body
PF: predicated region fallthrough
CT: control target
= control target key end

     0   :  { %s1960_s0 = inlined_call_operand.vmem [shape: f32[1,256], index: 0, kind: input, shape index: {}]   ;;  %s1961_s1 = inlined_call_operand.vmem [shape: bf16[64,32], index: 1, kind: input, shape index: {}]   ;;  %s1962_s2 = inlined_call_operand.<no memory space> [shape: bf16[], index: 2, kind: input, shape index: {}]   ;;  %s1963_s3 = inlined_call_operand.vmem [shape: bf16[32,64], index: 3, kind: input, shape index: {}]   ;;  %s1964_s4 = inlined_call_operand.vmem [shape: bf16[128,256], index: 4, kind: output, shape index: {}]  }
   0x1   :  { %v9_v0 = vstv %s1962_s2 }
   0x2   :  { %v1761_v1 = vunpack.i.l.bf16 %v9_v0 }
   0x3   :  { %v37_v9 = vlaneseq  ;;  %v1251_v11 = vld [vmem:[%s1961_s1 + $0x18] sm:$0xff]   ;;  %v1249_v18 = vld [vmem:[%s1961_s1 + $0x10] sm:$0xff]   ;;  %v1247_v23 = vld [vmem:[%s1961_s1 + $0x8] sm:$0xff]  }
   0x4   :  { %v1765_v2 = vpack.c.bf16 %v1761_v1, %v1761_v1  ;;  %v432_v16 = vunpack.c.l.bf16 %v1251_v11  ;;  %v460_v17 = vunpack.c.h.bf16 %v1251_v11  ;;  %v376_v26 = vunpack.c.l.bf16 %v1249_v18  ;;  %v264_v42 = vld [vmem:[%s1961_s1] sm:$0xff]  }
   0x5   :  { %v1789_v10 = vand.u32 127, %v37_v9  ;;  %v404_v29 = vunpack.c.h.bf16 %v1249_v18  ;;  %v320_v34 = vunpack.c.l.bf16 %v1247_v23  ;;  %v348_v37 = vunpack.c.h.bf16 %v1247_v23  ;;  %v34_v52 = vld [vmem:[%s1963_s3] sm:$0xff]  }
   0x6   :  { %1647 = vst [vmem:[#allocation13 + $0x70] sm:$0xff] %v1765_v2   ;;  %v265_v49 = vunpack.c.l.bf16 %v264_v42  ;;  %v292_v50 = vunpack.c.h.bf16 %v264_v42  ;;  %v35_v57 = vunpack.c.l.bf16 %v34_v52  ;;  %v62_v58 = vunpack.c.h.bf16 %v34_v52 }
   0x7   :  { %1652 = vst [vmem:[#allocation13 + $0x78] sm:$0xff] %v1765_v2   ;;  %vm270_vm0 = vcmp.lt.s32.totalorder %v1789_v10, 32  ;;  %vm40_vm1 = vcmp.lt.s32.totalorder %v1789_v10, 64 }
   0x8   :  { %1517 = vst [vmem:[#allocation12 + $0x20] sm:$0xff] %v1765_v2   ;;  %v438_v27 = vsel %vm270_vm0, %v432_v16, %v1761_v1  ;;  %v466_v28 = vsel %vm270_vm0, %v460_v17, %v1761_v1  ;;  %v382_v38 = vsel %vm270_vm0, %v376_v26, %v1761_v1  ;;  %v410_v41 = vsel %vm270_vm0, %v404_v29, %v1761_v1 }
   0x9   :  { %1522 = vst [vmem:[#allocation12 + $0x28] sm:$0xff] %v1765_v2   ;;  %v1606_v39 = vpack.c.bf16 %v1761_v1, %v438_v27  ;;  %v1611_v40 = vpack.c.bf16 %v1761_v1, %v466_v28  ;;  %v326_v45 = vsel %vm270_vm0, %v320_v34, %v1761_v1  ;;  %v1596_v46 = vpack.c.bf16 %v1761_v1, %v382_v38  ;;  %v1244_v28 = vld [vmem:[%s1963_s3 + $0x8] sm:$0xff]  }
   0xa   :  { %1527 = vst [vmem:[#allocation12 + $0x30] sm:$0xff] %v1765_v2   ;;  %v354_v47 = vsel %vm270_vm0, %v348_v37, %v1761_v1  ;;  %v1601_v48 = vpack.c.bf16 %v1761_v1, %v410_v41  ;;  %v1586_v51 = vpack.c.bf16 %v1761_v1, %v326_v45  ;;  %v271_v55 = vsel %vm270_vm0, %v265_v49, %v1761_v1 }
   0xb   :  { %1532 = vst [vmem:[#allocation12 + $0x38] sm:$0xff] %v1765_v2   ;;  %v1591_v53 = vpack.c.bf16 %v1761_v1, %v354_v47  ;;  %v298_v56 = vsel %vm270_vm0, %v292_v50, %v1761_v1  ;;  %v41_v9 = vsel %vm40_vm1, %v35_v57, %v1761_v1  ;;  %v68_v11 = vsel %vm40_vm1, %v62_v58, %v1761_v1 }
   0xc   :  { %1537 = vst [vmem:[#allocation12 + $0x40] sm:$0xff] %v1765_v2   ;;  %v1496_v26 = vpack.c.bf16 %v1761_v1, %v41_v9  ;;  %v1501_v27 = vpack.c.bf16 %v1761_v1, %v68_v11 }
   0xd   :  { %v1375_v3 = vld [vmem:[#allocation13 + $0x70] sm:$0xf]  ;;  %1542 = vst [vmem:[#allocation12 + $0x48] sm:$0xff] %v1765_v2   ;;  %v1475_v6 = vld [vmem:[#allocation13 + $0x74] sm:$0xf] }
   0xe   :  { %v1476_v4 = vld [vmem:[#allocation13 + $0x74] sm:$0xf0]  ;;  %1547 = vst [vmem:[#allocation12 + $0x50] sm:$0xff] %v1765_v2   ;;  %v1377_v7 = vld [vmem:[#allocation13 + $0x78] sm:$0xf0] }
   0xf   :  { %v1376_v5 = vor.u32 %v1476_v4, %v1375_v3  ;;  %1552 = vst [vmem:[#allocation12 + $0x58] sm:$0xff] %v1765_v2   ;;  %v1380_v8 = vor.u32 %v1475_v6, %v1377_v7  ;;  %v1576_v3 = vpack.c.bf16 %v1761_v1, %v271_v55  ;;  %v1581_v4 = vpack.c.bf16 %v1761_v1, %v298_v56 }
  0x10   :  { %1557 = vst [vmem:[#allocation12 + $0x60] sm:$0xff] %v1765_v2  }
  0x11   :  { %1011 = vmatpush.bf16.msra.mxu0 %v1376_v5  ;;  %1562 = vst [vmem:[#allocation12 + $0x68] sm:$0xff] %v1765_v2   ;;  %1109 = vmatpush.bf16.msra.mxu2 %v1380_v8 }
  0x12   :  { %1567 = vst [vmem:[#allocation12 + $0x70] sm:$0xff] %v1765_v2  }
  0x13   :  { %1572 = vst [vmem:[#allocation12 + $0x78] sm:$0xff] %v1765_v2  }
  0x14   :  { %1617 = vst [vmem:[#allocation13 + $0x40] sm:$0xff] %v1765_v2  }
  0x15   :  { %1622 = vst [vmem:[#allocation13 + $0x48] sm:$0xff] %v1765_v2  }
  0x16   :  { %1627 = vst [vmem:[#allocation13 + $0x50] sm:$0xff] %v1765_v2  }
  0x17   :  { %1632 = vst [vmem:[#allocation13 + $0x58] sm:$0xff] %v1765_v2  }
  0x18   :  { %1637 = vst [vmem:[#allocation13 + $0x60] sm:$0xff] %v1765_v2  }
  0x19   :  { %1642 = vst [vmem:[#allocation13 + $0x68] sm:$0xff] %v1765_v2  }
  0x1a   :  { %1657 = vst [vmem:[#allocation13 + $0x80] sm:$0xff] %v1765_v2  }
  0x1b   :  { %1662 = vst [vmem:[#allocation13 + $0x88] sm:$0xff] %v1765_v2   ;;  %v1351_v32 = vld [vmem:[#allocation13 + $0x40] sm:$0xf]  ;;  %v1469_v35 = vld [vmem:[#allocation13 + $0x44] sm:$0xf] }
  0x1c   :  { %1667 = vst [vmem:[#allocation13 + $0x90] sm:$0xff] %v1765_v2   ;;  %v1470_v33 = vld [vmem:[#allocation13 + $0x44] sm:$0xf0]  ;;  %v1353_v36 = vld [vmem:[#allocation13 + $0x48] sm:$0xf0] }
  0x1d   :  { %1672 = vst [vmem:[#allocation13 + $0x98] sm:$0xff] %v1765_v2   ;;  %v1359_v12 = vld [vmem:[#allocation13 + $0x50] sm:$0xf]  ;;  %v1471_v14 = vld [vmem:[#allocation13 + $0x54] sm:$0xf]  ;;  %v1352_v43 = vor.u32 %v1470_v33, %v1351_v32  ;;  %v1356_v44 = vor.u32 %v1469_v35, %v1353_v36  ;;  %v90_v32 = vunpack.c.l.bf16 %v1244_v28  ;;  %v118_v33 = vunpack.c.h.bf16 %v1244_v28 }
  0x1e   :  { %1677 = vst [vmem:[#allocation13 + $0xa0] sm:$0xff] %v1765_v2   ;;  %v1472_v13 = vld [vmem:[#allocation13 + $0x54] sm:$0xf0]  ;;  %v1361_v15 = vld [vmem:[#allocation13 + $0x58] sm:$0xf0] }
  0x1f   :  { %1682 = vst [vmem:[#allocation13 + $0xa8] sm:$0xff] %v1765_v2   ;;  %v1367_v19 = vld [vmem:[#allocation13 + $0x60] sm:$0xf]  ;;  %v1473_v20 = vld [vmem:[#allocation13 + $0x64] sm:$0xf]  ;;  %v1360_v30 = vor.u32 %v1472_v13, %v1359_v12  ;;  %v1364_v31 = vor.u32 %v1471_v14, %v1361_v15  ;;  %v96_v41 = vsel %vm40_vm1, %v90_v32, %v1761_v1  ;;  %v124_v45 = vsel %vm40_vm1, %v118_v33, %v1761_v1 }
  0x20   :  { %1687 = vst [vmem:[#allocation13 + $0xb0] sm:$0xff] %v1765_v2   ;;  %v1474_v21 = vld [vmem:[#allocation13 + $0x64] sm:$0xf0]  ;;  %v1369_v22 = vld [vmem:[#allocation13 + $0x68] sm:$0xf0] }
  0x21   :  { %1692 = vst [vmem:[#allocation13 + $0xb8] sm:$0xff] %v1765_v2   ;;  %v1368_v24 = vor.u32 %v1474_v21, %v1367_v19  ;;  %v1372_v25 = vor.u32 %v1473_v20, %v1369_v22  ;;  %v1271_v28 = vld [vmem:[#allocation12 + $0x20] sm:$0xf]  ;;  %v1449_v32 = vld [vmem:[#allocation12 + $0x24] sm:$0xf] }
  0x22   :  { %1697 = vst [vmem:[#allocation13 + $0xc0] sm:$0xff] %v1765_v2   ;;  %v1273_v33 = vld [vmem:[#allocation12 + $0x28] sm:$0xf0] }
  0x23   :  { %1702 = vst [vmem:[#allocation13 + $0xc8] sm:$0xff] %v1765_v2   ;;  %1012 = vmatpush.bf16.msra.mxu0 %v1368_v24  ;;  %1110 = vmatpush.bf16.msra.mxu2 %v1372_v25  ;;  %v1479_v9 = vld [vmem:[#allocation13 + $0x94] sm:$0xf] }
  0x24   :  { %1707 = vst [vmem:[#allocation13 + $0xd0] sm:$0xff] %v1765_v2   ;;  %v1393_v11 = vld [vmem:[#allocation13 + $0x98] sm:$0xf0] }
  0x25   :  { %1712 = vst [vmem:[#allocation13 + $0xd8] sm:$0xff] %v1765_v2  }
  0x26   :  { %1717 = vst [vmem:[#allocation13 + $0xe0] sm:$0xff] %v1765_v2  }
  0x27   :  { %1722 = vst [vmem:[#allocation13 + $0xe8] sm:$0xff] %v1765_v2   ;;  %1013 = vmatpush.bf16.msra.mxu0 %v1360_v30  ;;  %1111 = vmatpush.bf16.msra.mxu2 %v1364_v31  ;;  %v1407_v49 = vld [vmem:[#allocation13 + $0xb0] sm:$0xf] }
  0x28   :  { %1727 = vst [vmem:[#allocation13 + $0xf0] sm:$0xff] %v1765_v2   ;;  %v1484_v50 = vld [vmem:[#allocation13 + $0xb4] sm:$0xf0]  ;;  %v1409_v10 = vld [vmem:[#allocation13 + $0xb8] sm:$0xf0] }
  0x29   :  { %1732 = vst [vmem:[#allocation13 + $0xf8] sm:$0xff] %v1765_v2  }
  0x2a   :  { %1607 = vst [vmem:[#allocation13 + $0x30] sm:$0xff] %v1606_v39   ;;  %v1415_v39 = vld [vmem:[#allocation13 + $0xc0] sm:$0xf]  ;;  %v1486_v42 = vld [vmem:[#allocation13 + $0xc4] sm:$0xf0] }
  0x2b   :  { %1014 = vmatpush.bf16.msra.mxu0 %v1352_v43  ;;  %1112 = vmatpush.bf16.msra.mxu2 %v1356_v44  ;;  %1612 = vst [vmem:[#allocation13 + $0x38] sm:$0xff] %v1611_v40   ;;  %v1423_v13 = vld [vmem:[#allocation13 + $0xd0] sm:$0xf]  ;;  %v1487_v15 = vld [vmem:[#allocation13 + $0xd4] sm:$0xf]  ;;  %v1506_v44 = vpack.c.bf16 %v1761_v1, %v96_v41  ;;  %v1416_v52 = vor.u32 %v1486_v42, %v1415_v39 }
  0x2c   :  { %1597 = vst [vmem:[#allocation13 + $0x20] sm:$0xff] %v1596_v46   ;;  %v1488_v14 = vld [vmem:[#allocation13 + $0xd4] sm:$0xf0]  ;;  %v1425_v19 = vld [vmem:[#allocation13 + $0xd8] sm:$0xf0] }
  0x2d   :  { %v1431_v54 = vld [vmem:[#allocation13 + $0xe0] sm:$0xf]  ;;  %1602 = vst [vmem:[#allocation13 + $0x28] sm:$0xff] %v1601_v48   ;;  %v1489_v60 = vld [vmem:[#allocation13 + $0xe4] sm:$0xf]  ;;  %v1424_v37 = vor.u32 %v1488_v14, %v1423_v13  ;;  %v1428_v38 = vor.u32 %v1487_v15, %v1425_v19  ;;  %v1511_v48 = vpack.c.bf16 %v1761_v1, %v124_v45  ;;  %v1408_v1 = vor.u32 %v1484_v50, %v1407_v49 }
  0x2e   :  { %v1490_v59 = vld [vmem:[#allocation13 + $0xe4] sm:$0xf0]  ;;  %1587 = vst [vmem:[#allocation13 + $0x10] sm:$0xff] %v1586_v51   ;;  %v1433_v2 = vld [vmem:[#allocation13 + $0xe8] sm:$0xf0]  ;;  %v1396_v13 = vor.u32 %v1479_v9, %v1393_v11 }
  0x2f   :  { %v1439_v61 = vld [vmem:[#allocation13 + $0xf0] sm:$0xf]  ;;  %v1491_v62 = vld [vmem:[#allocation13 + $0xf4] sm:$0xf]  ;;  %1592 = vst [vmem:[#allocation13 + $0x18] sm:$0xff] %v1591_v53   ;;  %v1432_v12 = vor.u32 %v1490_v59, %v1431_v54  ;;  %v1436_v18 = vor.u32 %v1489_v60, %v1433_v2 }
  0x30   :  { %v1492_v63 = vld [vmem:[#allocation13 + $0xf4] sm:$0xf0]  ;;  %v1441_v0 = vld [vmem:[#allocation13 + $0xf8] sm:$0xf0]  ;;  %1577 = vst [vmem:[#allocation13] sm:$0xff] %v1576_v3  }
  0x31   :  { %v1440_v5 = vor.u32 %v1492_v63, %v1439_v61  ;;  %v1444_v6 = vor.u32 %v1491_v62, %v1441_v0  ;;  %v1343_v7 = vld [vmem:[#allocation13 + $0x30] sm:$0xf]  ;;  %v1467_v8 = vld [vmem:[#allocation13 + $0x34] sm:$0xf]  ;;  %1582 = vst [vmem:[#allocation13 + $0x8] sm:$0xff] %v1581_v4  }
  0x32   :  { %v1468_v16 = vld [vmem:[#allocation13 + $0x34] sm:$0xf0]  ;;  %v1345_v17 = vld [vmem:[#allocation13 + $0x38] sm:$0xf0]  ;;  %v1485_v40 = vld [vmem:[#allocation13 + $0xc4] sm:$0xf] }
  0x33   :  { %1060 = vmatpush.bf16.msra.mxu1 %v1440_v5  ;;  %1158 = vmatpush.bf16.msra.mxu3 %v1444_v6  ;;  %v1344_v20 = vor.u32 %v1468_v16, %v1343_v7  ;;  %v1348_v21 = vor.u32 %v1467_v8, %v1345_v17  ;;  %v1335_v22 = vld [vmem:[#allocation13 + $0x20] sm:$0xf]  ;;  %v1465_v23 = vld [vmem:[#allocation13 + $0x24] sm:$0xf]  ;;  %v1417_v43 = vld [vmem:[#allocation13 + $0xc8] sm:$0xf0] }
  0x34   :  { %v1466_v24 = vld [vmem:[#allocation13 + $0x24] sm:$0xf0]  ;;  %v1337_v25 = vld [vmem:[#allocation13 + $0x28] sm:$0xf0]  ;;  %1497 = vst [vmem:[#allocation12] sm:$0xff] %v1496_v26   ;;  %v1420_v53 = vor.u32 %v1485_v40, %v1417_v43 }
  0x35   :  { %1015 = vmatpush.bf16.msra.mxu0 %v1344_v20  ;;  %1113 = vmatpush.bf16.msra.mxu2 %v1348_v21  ;;  %v1336_v29 = vor.u32 %v1466_v24, %v1335_v22  ;;  %v1340_v30 = vor.u32 %v1465_v23, %v1337_v25  ;;  %v1327_v31 = vld [vmem:[#allocation13 + $0x10] sm:$0xf]  ;;  %v1463_v35 = vld [vmem:[#allocation13 + $0x14] sm:$0xf]  ;;  %1502 = vst [vmem:[#allocation12 + $0x8] sm:$0xff] %v1501_v27  }
  0x36   :  { %v1464_v34 = vld [vmem:[#allocation13 + $0x14] sm:$0xf0]  ;;  %v1329_v36 = vld [vmem:[#allocation13 + $0x18] sm:$0xf0]  ;;  %v1483_v51 = vld [vmem:[#allocation13 + $0xb4] sm:$0xf] }
  0x37   :  { %1061 = vmatpush.bf16.msra.mxu1 %v1432_v12  ;;  %1159 = vmatpush.bf16.msra.mxu3 %v1436_v18  ;;  %v1328_v46 = vor.u32 %v1464_v34, %v1327_v31  ;;  %v1332_v47 = vor.u32 %v1463_v35, %v1329_v36  ;;  %1507 = vst [vmem:[#allocation12 + $0x10] sm:$0xff] %v1506_v44   ;;  %v1319_v54 = vld [vmem:[#allocation13] sm:$0xf]  ;;  %v1461_v55 = vld [vmem:[#allocation13 + $0x4] sm:$0xf] }
  0x38   :  { %1512 = vst [vmem:[#allocation12 + $0x18] sm:$0xff] %v1511_v48   ;;  %v1462_v56 = vld [vmem:[#allocation13 + $0x4] sm:$0xf0]  ;;  %v1321_v57 = vld [vmem:[#allocation13 + $0x8] sm:$0xf0]  ;;  %v1412_v60 = vor.u32 %v1483_v51, %v1409_v10  ;;  %v1276_v36 = vor.u32 %v1449_v32, %v1273_v33 }
  0x39   :  { %1016 = vmatpush.bf16.msra.mxu0 %v1336_v29  ;;  %1114 = vmatpush.bf16.msra.mxu2 %v1340_v30  ;;  %v1320_v58 = vor.u32 %v1462_v56, %v1319_v54  ;;  %v1324_v59 = vor.u32 %v1461_v55, %v1321_v57  ;;  %v1399_v61 = vld [vmem:[#allocation13 + $0xa0] sm:$0xf]  ;;  %v1481_v62 = vld [vmem:[#allocation13 + $0xa4] sm:$0xf]  ;;  %v1482_v0 = vld [vmem:[#allocation13 + $0xa4] sm:$0xf0] }
  0x3a   :  { %v1401_v2 = vld [vmem:[#allocation13 + $0xa8] sm:$0xf0]  ;;  %v1400_v5 = vor.u32 %v1482_v0, %v1399_v61  ;;  %v1391_v7 = vld [vmem:[#allocation13 + $0x90] sm:$0xf]  ;;  %v1480_v8 = vld [vmem:[#allocation13 + $0x94] sm:$0xf0] }
  0x3b   :  { %1062 = vmatpush.bf16.msra.mxu1 %v1424_v37  ;;  %1160 = vmatpush.bf16.msra.mxu3 %v1428_v38  ;;  %v1255_v63 = vld [vmem:[#allocation12] sm:$0xf]  ;;  %v1404_v6 = vor.u32 %v1481_v62, %v1401_v2  ;;  %v1392_v12 = vor.u32 %v1480_v8, %v1391_v7  ;;  %v1478_v15 = vld [vmem:[#allocation13 + $0x84] sm:$0xf0]  ;;  %v1477_v16 = vld [vmem:[#allocation13 + $0x84] sm:$0xf] }
  0x3c   :  { %v1446_v3 = vld [vmem:[#allocation12 + $0x4] sm:$0xf0]  ;;  %v1383_v14 = vld [vmem:[#allocation13 + $0x80] sm:$0xf]  ;;  %v1385_v17 = vld [vmem:[#allocation13 + $0x88] sm:$0xf0] }
  0x3d   :  { %1017 = vmatpush.bf16.msra.mxu0 %v1328_v46  ;;  %1115 = vmatpush.bf16.msra.mxu2 %v1332_v47  ;;  %v1256_v4 = vor.u32 %v1446_v3, %v1255_v63  ;;  %v1384_v18 = vor.u32 %v1478_v15, %v1383_v14  ;;  %v1388_v19 = vor.u32 %v1477_v16, %v1385_v17  ;;  %v1445_v20 = vld [vmem:[#allocation12 + $0x4] sm:$0xf]  ;;  %v1257_v21 = vld [vmem:[#allocation12 + $0x8] sm:$0xf0]  ;;  %v1450_v29 = vld [vmem:[#allocation12 + $0x24] sm:$0xf0] }
  0x3e   :  { %v1263_v22 = vld [vmem:[#allocation12 + $0x10] sm:$0xf]  ;;  %v1260_v24 = vor.u32 %v1445_v20, %v1257_v21  ;;  %v1447_v26 = vld [vmem:[#allocation12 + $0x14] sm:$0xf]  ;;  %v1272_v31 = vor.u32 %v1450_v29, %v1271_v28  ;;  %v1452_v35 = vld [vmem:[#allocation12 + $0x34] sm:$0xf0] }
  0x3f   :  { %1063 = vmatpush.bf16.msra.mxu1 %v1416_v52  ;;  %1161 = vmatpush.bf16.msra.mxu3 %v1420_v53  ;;  %v1448_v23 = vld [vmem:[#allocation12 + $0x14] sm:$0xf0]  ;;  %v1265_v27 = vld [vmem:[#allocation12 + $0x18] sm:$0xf0]  ;;  %v1279_v34 = vld [vmem:[#allocation12 + $0x30] sm:$0xf] }
  0x40   :  { %v1264_v25 = vor.u32 %v1448_v23, %v1263_v22  ;;  %v1268_v30 = vor.u32 %v1447_v26, %v1265_v27  ;;  %v1280_v37 = vor.u32 %v1452_v35, %v1279_v34  ;;  %v1451_v38 = vld [vmem:[#allocation12 + $0x34] sm:$0xf]  ;;  %v1281_v39 = vld [vmem:[#allocation12 + $0x38] sm:$0xf0]  ;;  %v1287_v40 = vld [vmem:[#allocation12 + $0x40] sm:$0xf] }
  0x41   :  { %1018 = vmatpush.bf16.msra.mxu0 %v1320_v58  ;;  %1116 = vmatpush.bf16.msra.mxu2 %v1324_v59  ;;  %v1454_v41 = vld [vmem:[#allocation12 + $0x44] sm:$0xf0]  ;;  %v1284_v42 = vor.u32 %v1451_v38, %v1281_v39  ;;  %v1453_v44 = vld [vmem:[#allocation12 + $0x44] sm:$0xf]  ;;  %v1289_v45 = vld [vmem:[#allocation12 + $0x48] sm:$0xf0] }
  0x42   :  { %v1288_v43 = vor.u32 %v1454_v41, %v1287_v40  ;;  %v1295_v46 = vld [vmem:[#allocation12 + $0x50] sm:$0xf]  ;;  %v1456_v47 = vld [vmem:[#allocation12 + $0x54] sm:$0xf0]  ;;  %v1292_v48 = vor.u32 %v1453_v44, %v1289_v45  ;;  %v1455_v50 = vld [vmem:[#allocation12 + $0x54] sm:$0xf] }
  0x43   :  { %1064 = vmatpush.bf16.msra.mxu1 %v1408_v1  ;;  %1162 = vmatpush.bf16.msra.mxu3 %v1412_v60  ;;  %v1296_v49 = vor.u32 %v1456_v47, %v1295_v46  ;;  %v1297_v51 = vld [vmem:[#allocation12 + $0x58] sm:$0xf0]  ;;  %v1303_v52 = vld [vmem:[#allocation12 + $0x60] sm:$0xf]  ;;  %v1458_v53 = vld [vmem:[#allocation12 + $0x64] sm:$0xf0] }
  0x44   :  { %1019 = vmatmul.bf16.vlgmr.msra.gmra.mxu0 %v1256_v4  ;;  %1117 = vmatmul.bf16.vlgmr.msra.gmra.mxu2 %v1256_v4  ;;  %v1300_v54 = vor.u32 %v1455_v50, %v1297_v51  ;;  %v1304_v55 = vor.u32 %v1458_v53, %v1303_v52  ;;  %v1457_v10 = vld [vmem:[#allocation12 + $0x64] sm:$0xf]  ;;  %v1305_v56 = vld [vmem:[#allocation12 + $0x68] sm:$0xf0]  ;;  %v1311_v57 = vld [vmem:[#allocation12 + $0x70] sm:$0xf] }
  0x45   :  { %v1460_v58 = vld [vmem:[#allocation12 + $0x74] sm:$0xf0]  ;;  %v1308_v59 = vor.u32 %v1457_v10, %v1305_v56  ;;  %v1459_v60 = vld [vmem:[#allocation12 + $0x74] sm:$0xf]  ;;  %v1313_v61 = vld [vmem:[#allocation12 + $0x78] sm:$0xf0] }
  0x46   :  { %v1312_v1 = vor.u32 %v1460_v58, %v1311_v57  ;;  %v1316_v62 = vor.u32 %v1459_v60, %v1313_v61  ;;  %v765_v2 = vld [vmem:[%s1960_s0] sm:$0x3] }
  0x47   :  { %1065 = vmatpush.bf16.msra.mxu1 %v1400_v5  ;;  %1163 = vmatpush.bf16.msra.mxu3 %v1404_v6  ;;  %v1876_v4 = vperm.slane %v765_v2, 0  ;;  %v1878_v5 = vperm.slane %v765_v2, 1 }
  0x4b   :  { %1066 = vmatpush.bf16.msra.mxu1 %v1392_v12  ;;  %1164 = vmatpush.bf16.msra.mxu3 %v1396_v13 }
  0x4f   :  { %1067 = vmatpush.bf16.msra.mxu1 %v1384_v18  ;;  %1165 = vmatpush.bf16.msra.mxu3 %v1388_v19 }
  0x52   :  { %1068 = vmatmul.bf16.vlgmr.msra.gmra.mxu1 %v1260_v24  ;;  %1166 = vmatmul.bf16.vlgmr.msra.gmra.mxu3 %v1260_v24 }
  0x54   :  { %1024 = vmatmul.bf16.gmra.mxu0 %v1264_v25  ;;  %1122 = vmatmul.bf16.gmra.mxu2 %v1264_v25 }
  0x62   :  { %1073 = vmatmul.bf16.gmra.mxu1 %v1268_v30  ;;  %1171 = vmatmul.bf16.gmra.mxu3 %v1268_v30 }
  0x64   :  { %1029 = vmatmul.bf16.gmra.mxu0 %v1272_v31  ;;  %1127 = vmatmul.bf16.gmra.mxu2 %v1272_v31 }
  0x72   :  { %1078 = vmatmul.bf16.gmra.mxu1 %v1276_v36  ;;  %1176 = vmatmul.bf16.gmra.mxu3 %v1276_v36 }
  0x74   :  { %1034 = vmatmul.bf16.gmra.mxu0 %v1280_v37  ;;  %1132 = vmatmul.bf16.gmra.mxu2 %v1280_v37 }
  0x82   :  { %1083 = vmatmul.bf16.gmra.mxu1 %v1284_v42  ;;  %1181 = vmatmul.bf16.gmra.mxu3 %v1284_v42 }
  0x84   :  { %1039 = vmatmul.bf16.gmra.mxu0 %v1288_v43  ;;  %1137 = vmatmul.bf16.gmra.mxu2 %v1288_v43 }
  0x92   :  { %1088 = vmatmul.bf16.gmra.mxu1 %v1292_v48  ;;  %1186 = vmatmul.bf16.gmra.mxu3 %v1292_v48 }
  0x94   :  { %1044 = vmatmul.bf16.gmra.mxu0 %v1296_v49  ;;  %1142 = vmatmul.bf16.gmra.mxu2 %v1296_v49 }
  0xa2   :  { %1093 = vmatmul.bf16.gmra.mxu1 %v1300_v54  ;;  %1191 = vmatmul.bf16.gmra.mxu3 %v1300_v54 }
  0xa4   :  { %1049 = vmatmul.bf16.gmra.mxu0 %v1304_v55  ;;  %1147 = vmatmul.bf16.gmra.mxu2 %v1304_v55 }
  0xb2   :  { %1098 = vmatmul.bf16.gmra.mxu1 %v1308_v59  ;;  %1196 = vmatmul.bf16.gmra.mxu3 %v1308_v59 }
  0xb4   :  { %1054 = vmatmul.bf16.gmra.mxu0 %v1312_v1  ;;  %1152 = vmatmul.bf16.gmra.mxu2 %v1312_v1 }
  0xc1   :  { %v1020_v63 = vpop.f32.mrf.mxu0 }
  0xc2   :  { %1103 = vmatmul.bf16.gmra.mxu1 %v1316_v62  ;;  %1201 = vmatmul.bf16.gmra.mxu3 %v1316_v62  ;;  %v1021_v8 = vadd.f32 %v1020_v63, %v1876_v4 }
  0xc7   :  { %v1118_v0 = vpop.f32.mrf.mxu2 }
  0xc8   :  { %v1119_v11 = vadd.f32 %v1118_v0, %v1878_v5 }
  0xc9   :  { %v1022_v3 = vpop.f32.mrf.mxu0 }
  0xca   :  { %v1023_v19 = vadd.f32 %v1022_v3, %v1876_v4 }
  0xcf   :  { %v1069_v6 = vpop.f32.mrf.mxu1  ;;  %v1120_v7 = vpop.f32.mrf.mxu2 }
  0xd0   :  { %v1070_v12 = vadd.f32 %v1069_v6, %v1021_v8  ;;  %v1121_v20 = vadd.f32 %v1120_v7, %v1878_v5 }
  0xd1   :  { %v1025_v9 = vpop.f32.mrf.mxu0 }
  0xd2   :  { %v1026_v27 = vadd.f32 %v1025_v9, %v1876_v4 }
  0xd5   :  { %v1167_v13 = vpop.f32.mrf.mxu3 }
  0xd6   :  { %v1168_v14 = vadd.f32 %v1167_v13, %v1119_v11 }
  0xd7   :  { %v1071_v15 = vpop.f32.mrf.mxu1  ;;  %v1123_v16 = vpop.f32.mrf.mxu2 }
  0xd8   :  { %v1207_v17 = vpack.c.bf16 %v1168_v14, %v1070_v12  ;;  %v1072_v22 = vadd.f32 %v1071_v15, %v1023_v19  ;;  %v1124_v29 = vadd.f32 %v1123_v16, %v1878_v5 }
  0xd9   :  { %v1027_v18 = vpop.f32.mrf.mxu0 }
  0xda   :  { %1223 = vst [vmem:[%s1964_s4] sm:$0xff] %v1207_v17  ;;  %v1028_v37 = vadd.f32 %v1027_v18, %v1876_v4 }
  0xdd   :  { %v1169_v21 = vpop.f32.mrf.mxu3 }
  0xde   :  { %v1170_v23 = vadd.f32 %v1169_v21, %v1121_v20 }
  0xdf   :  { %v1074_v24 = vpop.f32.mrf.mxu1  ;;  %v1125_v25 = vpop.f32.mrf.mxu2 }
  0xe0   :  { %v1208_v26 = vpack.c.bf16 %v1170_v23, %v1072_v22  ;;  %v1075_v30 = vadd.f32 %v1074_v24, %v1026_v27  ;;  %v1126_v38 = vadd.f32 %v1125_v25, %v1878_v5 }
  0xe1   :  { %v1030_v28 = vpop.f32.mrf.mxu0 }
  0xe2   :  { %1224 = vst [vmem:[%s1964_s4 + $0x8] sm:$0xff] %v1208_v26  ;;  %v1031_v45 = vadd.f32 %v1030_v28, %v1876_v4 }
  0xe5   :  { %v1172_v31 = vpop.f32.mrf.mxu3 }
  0xe6   :  { %v1173_v32 = vadd.f32 %v1172_v31, %v1124_v29 }
  0xe7   :  { %v1076_v33 = vpop.f32.mrf.mxu1  ;;  %v1128_v34 = vpop.f32.mrf.mxu2 }
  0xe8   :  { %v1209_v35 = vpack.c.bf16 %v1173_v32, %v1075_v30  ;;  %v1077_v40 = vadd.f32 %v1076_v33, %v1028_v37  ;;  %v1129_v47 = vadd.f32 %v1128_v34, %v1878_v5 }
  0xe9   :  { %v1032_v36 = vpop.f32.mrf.mxu0 }
  0xea   :  { %1225 = vst [vmem:[%s1964_s4 + $0x10] sm:$0xff] %v1209_v35  ;;  %v1033_v55 = vadd.f32 %v1032_v36, %v1876_v4 }
  0xed   :  { %v1174_v39 = vpop.f32.mrf.mxu3 }
  0xee   :  { %v1175_v41 = vadd.f32 %v1174_v39, %v1126_v38 }
  0xef   :  { %v1079_v42 = vpop.f32.mrf.mxu1  ;;  %v1130_v43 = vpop.f32.mrf.mxu2 }
  0xf0   :  { %v1210_v44 = vpack.c.bf16 %v1175_v41, %v1077_v40  ;;  %v1080_v48 = vadd.f32 %v1079_v42, %v1031_v45  ;;  %v1131_v10 = vadd.f32 %v1130_v43, %v1878_v5 }
  0xf1   :  { %v1035_v46 = vpop.f32.mrf.mxu0 }
  0xf2   :  { %1226 = vst [vmem:[%s1964_s4 + $0x18] sm:$0xff] %v1210_v44  ;;  %v1036_v61 = vadd.f32 %v1035_v46, %v1876_v4 }
  0xf5   :  { %v1177_v49 = vpop.f32.mrf.mxu3 }
  0xf6   :  { %v1178_v50 = vadd.f32 %v1177_v49, %v1129_v47 }
  0xf7   :  { %v1081_v51 = vpop.f32.mrf.mxu1  ;;  %v1133_v52 = vpop.f32.mrf.mxu2 }
  0xf8   :  { %v1211_v53 = vpack.c.bf16 %v1178_v50, %v1080_v48  ;;  %v1082_v57 = vadd.f32 %v1081_v51, %v1033_v55  ;;  %v1134_v63 = vadd.f32 %v1133_v52, %v1878_v5 }
  0xf9   :  { %v1037_v54 = vpop.f32.mrf.mxu0 }
  0xfa   :  { %1227 = vst [vmem:[%s1964_s4 + $0x20] sm:$0xff] %v1211_v53  ;;  %v1038_v9 = vadd.f32 %v1037_v54, %v1876_v4 }
  0xfd   :  { %v1179_v56 = vpop.f32.mrf.mxu3 }
  0xfe   :  { %v1180_v58 = vadd.f32 %v1179_v56, %v1131_v10 }
  0xff   :  { %v1084_v59 = vpop.f32.mrf.mxu1  ;;  %v1135_v1 = vpop.f32.mrf.mxu2 }
 0x100   :  { %v1212_v60 = vpack.c.bf16 %v1180_v58, %v1082_v57  ;;  %v1085_v0 = vadd.f32 %v1084_v59, %v1036_v61  ;;  %v1136_v11 = vadd.f32 %v1135_v1, %v1878_v5 }
 0x101   :  { %v1040_v62 = vpop.f32.mrf.mxu0 }
 0x102   :  { %1228 = vst [vmem:[%s1964_s4 + $0x28] sm:$0xff] %v1212_v60  ;;  %v1041_v19 = vadd.f32 %v1040_v62, %v1876_v4 }
 0x105   :  { %v1182_v2 = vpop.f32.mrf.mxu3 }
 0x106   :  { %v1183_v3 = vadd.f32 %v1182_v2, %v1134_v63 }
 0x107   :  { %v1086_v6 = vpop.f32.mrf.mxu1  ;;  %v1138_v7 = vpop.f32.mrf.mxu2 }
 0x108   :  { %v1213_v8 = vpack.c.bf16 %v1183_v3, %v1085_v0  ;;  %v1087_v14 = vadd.f32 %v1086_v6, %v1038_v9  ;;  %v1139_v20 = vadd.f32 %v1138_v7, %v1878_v5 }
 0x109   :  { %v1042_v12 = vpop.f32.mrf.mxu0 }
 0x10a   :  { %1229 = vst [vmem:[%s1964_s4 + $0x30] sm:$0xff] %v1213_v8  ;;  %v1043_v28 = vadd.f32 %v1042_v12, %v1876_v4 }
 0x10d   :  { %v1184_v13 = vpop.f32.mrf.mxu3 }
 0x10e   :  { %v1185_v15 = vadd.f32 %v1184_v13, %v1136_v11 }
 0x10f   :  { %v1089_v16 = vpop.f32.mrf.mxu1  ;;  %v1140_v17 = vpop.f32.mrf.mxu2 }
 0x110   :  { %v1214_v18 = vpack.c.bf16 %v1185_v15, %v1087_v14  ;;  %v1090_v21 = vadd.f32 %v1089_v16, %v1041_v19  ;;  %v1141_v29 = vadd.f32 %v1140_v17, %v1878_v5 }
 0x111   :  { %v1045_v22 = vpop.f32.mrf.mxu0 }
 0x112   :  { %1230 = vst [vmem:[%s1964_s4 + $0x38] sm:$0xff] %v1214_v18  ;;  %v1046_v37 = vadd.f32 %v1045_v22, %v1876_v4 }
 0x115   :  { %v1187_v23 = vpop.f32.mrf.mxu3 }
 0x116   :  { %v1188_v24 = vadd.f32 %v1187_v23, %v1139_v20 }
 0x117   :  { %v1091_v25 = vpop.f32.mrf.mxu1  ;;  %v1143_v26 = vpop.f32.mrf.mxu2 }
 0x118   :  { %v1215_v27 = vpack.c.bf16 %v1188_v24, %v1090_v21  ;;  %v1092_v31 = vadd.f32 %v1091_v25, %v1043_v28  ;;  %v1144_v38 = vadd.f32 %v1143_v26, %v1878_v5 }
 0x119   :  { %v1047_v33 = vpop.f32.mrf.mxu0 }
 0x11a   :  { %1231 = vst [vmem:[%s1964_s4 + $0x40] sm:$0xff] %v1215_v27  ;;  %v1048_v46 = vadd.f32 %v1047_v33, %v1876_v4 }
 0x11d   :  { %v1189_v30 = vpop.f32.mrf.mxu3 }
 0x11e   :  { %v1190_v32 = vadd.f32 %v1189_v30, %v1141_v29 }
 0x11f   :  { %v1094_v34 = vpop.f32.mrf.mxu1  ;;  %v1145_v35 = vpop.f32.mrf.mxu2 }
 0x120   :  { %v1216_v36 = vpack.c.bf16 %v1190_v32, %v1092_v31  ;;  %v1095_v39 = vadd.f32 %v1094_v34, %v1046_v37  ;;  %v1146_v47 = vadd.f32 %v1145_v35, %v1878_v5 }
 0x121   :  { %v1050_v44 = vpop.f32.mrf.mxu0 }
 0x122   :  { %1232 = vst [vmem:[%s1964_s4 + $0x48] sm:$0xff] %v1216_v36  ;;  %v1051_v53 = vadd.f32 %v1050_v44, %v1876_v4 }
 0x125   :  { %v1192_v40 = vpop.f32.mrf.mxu3 }
 0x126   :  { %v1193_v41 = vadd.f32 %v1192_v40, %v1144_v38 }
 0x127   :  { %v1096_v42 = vpop.f32.mrf.mxu1  ;;  %v1148_v45 = vpop.f32.mrf.mxu2 }
 0x128   :  { %v1217_v43 = vpack.c.bf16 %v1193_v41, %v1095_v39  ;;  %v1097_v49 = vadd.f32 %v1096_v42, %v1048_v46  ;;  %v1149_v54 = vadd.f32 %v1148_v45, %v1878_v5 }
 0x129   :  { %v1052_v55 = vpop.f32.mrf.mxu0 }
 0x12a   :  { %1233 = vst [vmem:[%s1964_s4 + $0x50] sm:$0xff] %v1217_v43  ;;  %v1053_v60 = vadd.f32 %v1052_v55, %v1876_v4 }
 0x12d   :  { %v1194_v48 = vpop.f32.mrf.mxu3 }
 0x12e   :  { %v1195_v50 = vadd.f32 %v1194_v48, %v1146_v47 }
 0x12f   :  { %v1099_v51 = vpop.f32.mrf.mxu1  ;;  %v1150_v10 = vpop.f32.mrf.mxu2 }
 0x130   :  { %v1218_v52 = vpack.c.bf16 %v1195_v50, %v1097_v49  ;;  %v1100_v56 = vadd.f32 %v1099_v51, %v1051_v53  ;;  %v1151_v61 = vadd.f32 %v1150_v10, %v1878_v5 }
 0x131   :  { %v1055_v62 = vpop.f32.mrf.mxu0 }
 0x132   :  { %1234 = vst [vmem:[%s1964_s4 + $0x58] sm:$0xff] %v1218_v52  ;;  %v1056_v7 = vadd.f32 %v1055_v62, %v1876_v4 }
 0x135   :  { %v1197_v57 = vpop.f32.mrf.mxu3 }
 0x136   :  { %v1198_v58 = vadd.f32 %v1197_v57, %v1149_v54 }
 0x137   :  { %v1101_v1 = vpop.f32.mrf.mxu1  ;;  %v1153_v0 = vpop.f32.mrf.mxu2 }
 0x138   :  { %v1219_v59 = vpack.c.bf16 %v1198_v58, %v1100_v56  ;;  %v1102_v2 = vadd.f32 %v1101_v1, %v1053_v60  ;;  %v1154_v8 = vadd.f32 %v1153_v0, %v1878_v5 }
 0x139   :  { %v1057_v14 = vpop.f32.mrf.mxu0 }
 0x13a   :  { %1235 = vst [vmem:[%s1964_s4 + $0x60] sm:$0xff] %v1219_v59  ;;  %v1058_v17 = vadd.f32 %v1057_v14, %v1876_v4 }
 0x13d   :  { %v1199_v63 = vpop.f32.mrf.mxu3 }
 0x13e   :  { %v1200_v3 = vadd.f32 %v1199_v63, %v1151_v61 }
 0x13f   :  { %v1104_v9 = vpop.f32.mrf.mxu1  ;;  %v1155_v15 = vpop.f32.mrf.mxu2 }
 0x140   :  { %v1220_v6 = vpack.c.bf16 %v1200_v3, %v1102_v2  ;;  %v1105_v11 = vadd.f32 %v1104_v9, %v1056_v7  ;;  %v1156_v18 = vadd.f32 %v1155_v15, %v1878_v5 }
 0x142   :  { %1236 = vst [vmem:[%s1964_s4 + $0x68] sm:$0xff] %v1220_v6 }
 0x145   :  { %v1202_v12 = vpop.f32.mrf.mxu3 }
 0x146   :  { %v1203_v13 = vadd.f32 %v1202_v12, %v1154_v8 }
 0x147   :  { %v1106_v19 = vpop.f32.mrf.mxu1 }
 0x148   :  { %v1221_v16 = vpack.c.bf16 %v1203_v13, %v1105_v11  ;;  %v1107_v21 = vadd.f32 %v1106_v19, %v1058_v17 }
 0x14a   :  { %1237 = vst [vmem:[%s1964_s4 + $0x70] sm:$0xff] %v1221_v16 }
 0x14d   :  { %v1204_v20 = vpop.f32.mrf.mxu3 }
 0x14e   :  { %v1205_v22 = vadd.f32 %v1204_v20, %v1156_v18 }
 0x150   :  { %v1222_v23 = vpack.c.bf16 %v1205_v22, %v1107_v21 }
 0x152   :  { %1238 = vst [vmem:[%s1964_s4 + $0x78] sm:$0xff] %v1222_v23 }

</bundles_post_ra>
